<compile_context>
chip_gen: v7x
topology: tpu7x:2x2x1
jax: 0.10.0
libtpu: 0.0.40
codegen_flags: <defaults>
</compile_context>

<pallas_src>
import functools
import math

import jax
import jax.numpy as jnp
from jax import lax
from jax.experimental import pallas as pl
from jax.experimental.pallas import tpu as pltpu


def _round_up(x, m):
    return (x + m - 1) // m * m


def _cascade_kernel(x_ref, wmat_ref, prop_ref, out_ref, *, d_in, n_hidden, w_pad, chunk):
    """Cascade forward for one batch tile, processed in register-resident row chunks.

    x_ref   : (TN, din_pad)   zero-padded input batch rows
    wmat_ref: (din_pad, w_pad) input -> activation-cache-lane weights (incl. x identity)
    prop_ref: (H_rows, w_pad)  hidden -> (later hidden, logit) weights, output-lane layout
    out_ref : (TN, w_pad)      activation cache; logit stored in lane w_pad-1
    """
    col0 = 1 + d_in                      # first hidden-activation lane
    tile_rows = out_ref.shape[0]

    if n_hidden > 0:
        # Hoisted: broadcast_in_dim is not CSE'd by JAX, build the lane iota once.
        lane = lax.broadcasted_iota(jnp.int32, (chunk, w_pad), 1)
        hid_mask = jnp.logical_and(lane >= col0, lane < col0 + n_hidden)

    for c in range(tile_rows // chunk):
        r = c * chunk
        # MXU: input contribution to every hidden pre-act + the logit, plus the identity
        # pass-through that drops x into activation lanes 1..d_in (lane 0 stays 0).
        z = jnp.dot(x_ref[pl.ds(r, chunk), :], wmat_ref[...],
                    precision=lax.Precision.HIGHEST,
                    preferred_element_type=jnp.float32)          # (chunk, w_pad)

        # Serial cascade: neuron h's pre-act (lane col0+h) is final once steps < h have
        # run (prop rows are strictly upper-triangular over the hidden lanes).  Each step
        # is one EUP tanh + one rank-1 VPU FMA over the register-resident chunk.
        # TODO(synk): for n_hidden >~ 128, block this loop (serial inside a 128-wide
        #             hidden block, MXU matmul across blocks) and use lax.fori_loop to
        #             bound code size / live ranges.
        for h in range(n_hidden):
            pre = z[:, col0 + h:col0 + h + 1]                    # (chunk, 1)
            a_h = 0.5 * jnp.tanh(0.5 * pre) + 0.5                # sigmoid, single EUP op
            z = z + a_h * prop_ref[h:h + 1, :]                   # rank-1 update (VPU)

        # Hidden lanes get the sigmoid; x / logit / padding lanes pass through.
        # One unmasked lane-dense store per chunk.
        if n_hidden > 0:
            out_chunk = jnp.where(hid_mask, 0.5 * jnp.tanh(0.5 * z) + 0.5, z)
        else:
            out_chunk = z
        out_ref[pl.ds(r, chunk), :] = out_chunk


def constr_casc_forward(x, wh_rows, wout, *, n_hidden, tile_n=None):
    """Forward pass of the constructive-cascade binary classifier.

    x       : (N, D_in) input batch.
    wh_rows : (n_hidden, 1 + D_in + n_hidden) hidden weights; row h uses its first
              1 + D_in + h entries (anything beyond is ignored by construction here).
    wout    : (1 + D_in + n_hidden,) extended output (readout) weights.

    Returns (logit (N, 1), activation cache (N, 1 + D_in + n_hidden)).
    """
    n, d_in = x.shape
    w = 1 + d_in + n_hidden
    w_pad = _round_up(w + 1, 128)            # +1 guarantees a spare lane for the logit
    din_pad = _round_up(max(d_in, 1), 128)
    h_rows = _round_up(max(n_hidden, 1), 8)

    if tile_n is None:
        if n <= 128:
            tile_n = _round_up(max(n, 8), 8)
        else:
            # >= 2 tiles so both v7x TensorCores get work; multiple of the 128-row
            # register-resident chunk; capped so pipeline VMEM stays at a few MiB.
            tile_n = min(1024, _round_up(-(-n // 2), 128))
    tile_n = _round_up(tile_n, 8)
    chunk = math.gcd(tile_n, 128)            # per-chunk z is <= 16 vregs at w_pad=128
    n_pad = _round_up(n, tile_n)

    x = x.astype(jnp.float32)
    wh_rows = wh_rows.astype(jnp.float32)
    wout = wout.astype(jnp.float32).reshape(-1)

    # Input rows, zero-padded; no hidden/logit columns shipped to HBM.
    x_pad = jnp.zeros((n_pad, din_pad), jnp.float32).at[:n, :d_in].set(x)

    # Input -> activation-cache-lane weights (column layout == output lanes).
    # Lane 0 stays 0 (the PyTorch forward(X) path overwrites the bias 1 with X[:, 0]);
    # lanes 1..d_in are an identity pass-through of x; lanes 1+d_in..d_in+n_hidden carry
    # the input parts of the hidden pre-acts; lane w_pad-1 carries the input part of the
    # logit readout.
    wmat = jnp.zeros((din_pad, w_pad), jnp.float32)
    wmat = wmat.at[jnp.arange(d_in), 1 + jnp.arange(d_in)].set(1.0)
    if n_hidden > 0:
        wmat = wmat.at[:d_in, 1 + d_in:1 + d_in + n_hidden].set(wh_rows[:, 1:1 + d_in].T)
    wmat = wmat.at[:d_in, w_pad - 1].set(wout[1:1 + d_in])

    # Hidden -> (later hidden, logit) propagation rows, in output-lane coordinates.
    # The strict upper triangle is enforced explicitly, so undefined wh_rows entries
    # beyond each neuron's valid length are ignored.
    prop = jnp.zeros((h_rows, w_pad), jnp.float32)
    if n_hidden > 0:
        hid_tri = jnp.triu(wh_rows[:, 1 + d_in:1 + d_in + n_hidden].T, k=1)
        prop = prop.at[:n_hidden, 1 + d_in:1 + d_in + n_hidden].set(hid_tri)
        prop = prop.at[:n_hidden, w_pad - 1].set(wout[1 + d_in:1 + d_in + n_hidden])

    kernel = functools.partial(_cascade_kernel, d_in=d_in, n_hidden=n_hidden,
                               w_pad=w_pad, chunk=chunk)
    grid = (n_pad // tile_n,)
    out = pl.pallas_call(
        kernel,
        grid_spec=pl.GridSpec(
            grid=grid,
            in_specs=[
                pl.BlockSpec((tile_n, din_pad), lambda i: (i, 0)),
                pl.BlockSpec((din_pad, w_pad), lambda i: (0, 0)),
                pl.BlockSpec((h_rows, w_pad), lambda i: (0, 0)),
            ],
            out_specs=pl.BlockSpec((tile_n, w_pad), lambda i: (i, 0)),
        ),
        out_shape=jax.ShapeDtypeStruct((n_pad, w_pad), jnp.float32),
        compiler_params=pltpu.CompilerParams(
            dimension_semantics=("parallel",)),
    )(x_pad, wmat, prop)

    logit = out[:n, w_pad - 1:w_pad]
    activations = out[:n, :w]
    return logit, activations


def _xavier_uniform(key, rows):
    # xavier_uniform on a (rows, 1) column vector, gain('sigmoid') = 1.0
    bound = (6.0 / (rows + 1)) ** 0.5
    return jax.random.uniform(key, (rows,), jnp.float32, -bound, bound)


def _make_params(key, d_in, n_hidden):
    w = 1 + d_in + n_hidden
    keys = jax.random.split(key, n_hidden + 1)
    wh_rows = jnp.zeros((max(n_hidden, 1), w), jnp.float32)
    for h in range(n_hidden):
        wh_rows = wh_rows.at[h, :1 + d_in + h].set(_xavier_uniform(keys[h], 1 + d_in + h))
    wout = _xavier_uniform(keys[n_hidden], w)
    return wh_rows, wout


def forward_reference(x, wh_rows, wout, *, d_in, n_hidden):
    """Pure-JAX replica of the PyTorch forward(X) path (f32 sums, no MXU)."""
    n = x.shape[0]
    w = 1 + d_in + n_hidden
    a = jnp.zeros((n, w), jnp.float32)
    a = a.at[:, 1].set(1.0)                 # exact (quirky) PyTorch behavior
    a = a.at[:, 1:1 + d_in].set(x)
    for h in range(n_hidden):
        k = 1 + d_in + h
        z = jnp.sum(a[:, :k] * wh_rows[h, :k][None, :], axis=1)
        a = a.at[:, k].set(jax.nn.sigmoid(z))
    logit = jnp.sum(a * wout[None, :], axis=1, keepdims=True)
    return logit, a


if __name__ == "__main__":
    key = jax.random.PRNGKey(0)
    configs = [
        dict(n=8, d_in=8, n_hidden=4, tile_n=None),     # small demo, grid=(1,), 1 chunk
        dict(n=300, d_in=20, n_hidden=6, tile_n=128),   # 3 tiles + batch padding
    ]

    ok = True
    for cfg in configs:
        key, kx, kp = jax.random.split(key, 3)
        x = jax.random.normal(kx, (cfg["n"], cfg["d_in"]), jnp.float32)
        wh_rows, wout = _make_params(kp, cfg["d_in"], cfg["n_hidden"])

        logit, acts = constr_casc_forward(
            x, wh_rows, wout, n_hidden=cfg["n_hidden"], tile_n=cfg["tile_n"])
        jax.block_until_ready((logit, acts))

        logit_ref, acts_ref = forward_reference(
            x, wh_rows, wout, d_in=cfg["d_in"], n_hidden=cfg["n_hidden"])

        ok &= bool(jnp.allclose(logit, logit_ref, rtol=1e-4, atol=1e-4))
        ok &= bool(jnp.allclose(acts, acts_ref, rtol=1e-4, atol=1e-4))

    assert ok, "mismatch vs pure-JAX reference"
    print("KERNEL_OK")
</pallas_src>

<mosaic_0001>
module attributes {stable_mosaic.version = 11 : i64} {
  func.func @_cascade_kernel(%arg0: i32, %arg1: memref<8x128xf32, #tpu.memory_space<vmem>>, %arg2: memref<128x128xf32, #tpu.memory_space<vmem>>, %arg3: memref<8x128xf32, #tpu.memory_space<vmem>>, %arg4: memref<8x128xf32, #tpu.memory_space<vmem>>) attributes {dimension_semantics = [#tpu.dimension_semantics<parallel>], iteration_bounds = array<i64: 1>, scalar_prefetch = 0 : i64, scratch_operands = 0 : i64, tpu.core_type = #tpu.core_type<tc>, window_params = [{transform_indices = @transform_0, window_bounds = array<i64: 8, 128>}, {pipeline_mode = #tpu.pipeline_mode<synchronous>, transform_indices = @transform_1, window_bounds = array<i64: 128, 128>}, {pipeline_mode = #tpu.pipeline_mode<synchronous>, transform_indices = @transform_2, window_bounds = array<i64: 8, 128>}, {transform_indices = @transform_3, window_bounds = array<i64: 8, 128>}]} {
    %0 = tpu.iota {dimensions = array<i32: 1>} : vector<8x128xi32>
    %c9_i32 = arith.constant 9 : i32
    %1 = vector.broadcast %c9_i32 : i32 to vector<8x128xi32>
    %2 = arith.cmpi sge, %0, %1 : vector<8x128xi32>
    %c13_i32 = arith.constant 13 : i32
    %3 = vector.broadcast %c13_i32 : i32 to vector<8x128xi32>
    %4 = arith.cmpi slt, %0, %3 : vector<8x128xi32>
    %5 = arith.andi %2, %4 : vector<8x128xi1>
    %c0 = arith.constant 0 : index
    %c0_0 = arith.constant 0 : index
    %6 = vector.load %arg1[%c0, %c0_0] : memref<8x128xf32, #tpu.memory_space<vmem>>, vector<8x128xf32>
    %c0_1 = arith.constant 0 : index
    %c0_2 = arith.constant 0 : index
    %7 = vector.load %arg2[%c0_1, %c0_2] : memref<128x128xf32, #tpu.memory_space<vmem>>, vector<128x128xf32>
    %cst = arith.constant dense<0.000000e+00> : vector<8x128xf32>
    %8 = tpu.matmul %6, %7, %cst {dimension_numbers = #tpu.dot_dimension_numbers<[1], [0], [0], [1], [0, 0, 1, 1], [], []>, precision = #tpu.contract_precision<fp32>} : vector<8x128xf32>, vector<128x128xf32>, vector<8x128xf32> -> vector<8x128xf32>
    %9 = vector.extract_strided_slice %8 {offsets = [0, 9], sizes = [8, 1], strides = [1, 1]} : vector<8x128xf32> to vector<8x1xf32>
    %cst_3 = arith.constant 5.000000e-01 : f32
    %10 = vector.broadcast %cst_3 : f32 to vector<8x1xf32>
    %11 = arith.mulf %10, %9 : vector<8x1xf32>
    %12 = math.tanh %11 : vector<8x1xf32>
    %cst_4 = arith.constant 5.000000e-01 : f32
    %13 = vector.broadcast %cst_4 : f32 to vector<8x1xf32>
    %14 = arith.mulf %13, %12 : vector<8x1xf32>
    %cst_5 = arith.constant 5.000000e-01 : f32
    %15 = vector.broadcast %cst_5 : f32 to vector<8x1xf32>
    %16 = arith.addf %14, %15 : vector<8x1xf32>
    %c0_6 = arith.constant 0 : index
    %c0_7 = arith.constant 0 : index
    %17 = vector.load %arg3[%c0_6, %c0_7] : memref<8x128xf32, #tpu.memory_space<vmem>>, vector<1x128xf32>
    %18 = vector.broadcast %16 : vector<8x1xf32> to vector<8x128xf32>
    %19 = vector.broadcast %17 : vector<1x128xf32> to vector<8x128xf32>
    %20 = arith.mulf %18, %19 : vector<8x128xf32>
    %21 = arith.addf %8, %20 : vector<8x128xf32>
    %22 = vector.extract_strided_slice %21 {offsets = [0, 10], sizes = [8, 1], strides = [1, 1]} : vector<8x128xf32> to vector<8x1xf32>
    %cst_8 = arith.constant 5.000000e-01 : f32
    %23 = vector.broadcast %cst_8 : f32 to vector<8x1xf32>
    %24 = arith.mulf %23, %22 : vector<8x1xf32>
    %25 = math.tanh %24 : vector<8x1xf32>
    %cst_9 = arith.constant 5.000000e-01 : f32
    %26 = vector.broadcast %cst_9 : f32 to vector<8x1xf32>
    %27 = arith.mulf %26, %25 : vector<8x1xf32>
    %cst_10 = arith.constant 5.000000e-01 : f32
    %28 = vector.broadcast %cst_10 : f32 to vector<8x1xf32>
    %29 = arith.addf %27, %28 : vector<8x1xf32>
    %c1 = arith.constant 1 : index
    %c0_11 = arith.constant 0 : index
    %30 = vector.load %arg3[%c1, %c0_11] : memref<8x128xf32, #tpu.memory_space<vmem>>, vector<1x128xf32>
    %31 = vector.broadcast %29 : vector<8x1xf32> to vector<8x128xf32>
    %32 = vector.broadcast %30 : vector<1x128xf32> to vector<8x128xf32>
    %33 = arith.mulf %31, %32 : vector<8x128xf32>
    %34 = arith.addf %21, %33 : vector<8x128xf32>
    %35 = vector.extract_strided_slice %34 {offsets = [0, 11], sizes = [8, 1], strides = [1, 1]} : vector<8x128xf32> to vector<8x1xf32>
    %cst_12 = arith.constant 5.000000e-01 : f32
    %36 = vector.broadcast %cst_12 : f32 to vector<8x1xf32>
    %37 = arith.mulf %36, %35 : vector<8x1xf32>
    %38 = math.tanh %37 : vector<8x1xf32>
    %cst_13 = arith.constant 5.000000e-01 : f32
    %39 = vector.broadcast %cst_13 : f32 to vector<8x1xf32>
    %40 = arith.mulf %39, %38 : vector<8x1xf32>
    %cst_14 = arith.constant 5.000000e-01 : f32
    %41 = vector.broadcast %cst_14 : f32 to vector<8x1xf32>
    %42 = arith.addf %40, %41 : vector<8x1xf32>
    %c2 = arith.constant 2 : index
    %c0_15 = arith.constant 0 : index
    %43 = vector.load %arg3[%c2, %c0_15] : memref<8x128xf32, #tpu.memory_space<vmem>>, vector<1x128xf32>
    %44 = vector.broadcast %42 : vector<8x1xf32> to vector<8x128xf32>
    %45 = vector.broadcast %43 : vector<1x128xf32> to vector<8x128xf32>
    %46 = arith.mulf %44, %45 : vector<8x128xf32>
    %47 = arith.addf %34, %46 : vector<8x128xf32>
    %48 = vector.extract_strided_slice %47 {offsets = [0, 12], sizes = [8, 1], strides = [1, 1]} : vector<8x128xf32> to vector<8x1xf32>
    %cst_16 = arith.constant 5.000000e-01 : f32
    %49 = vector.broadcast %cst_16 : f32 to vector<8x1xf32>
    %50 = arith.mulf %49, %48 : vector<8x1xf32>
    %51 = math.tanh %50 : vector<8x1xf32>
    %cst_17 = arith.constant 5.000000e-01 : f32
    %52 = vector.broadcast %cst_17 : f32 to vector<8x1xf32>
    %53 = arith.mulf %52, %51 : vector<8x1xf32>
    %cst_18 = arith.constant 5.000000e-01 : f32
    %54 = vector.broadcast %cst_18 : f32 to vector<8x1xf32>
    %55 = arith.addf %53, %54 : vector<8x1xf32>
    %c3 = arith.constant 3 : index
    %c0_19 = arith.constant 0 : index
    %56 = vector.load %arg3[%c3, %c0_19] : memref<8x128xf32, #tpu.memory_space<vmem>>, vector<1x128xf32>
    %57 = vector.broadcast %55 : vector<8x1xf32> to vector<8x128xf32>
    %58 = vector.broadcast %56 : vector<1x128xf32> to vector<8x128xf32>
    %59 = arith.mulf %57, %58 : vector<8x128xf32>
    %60 = arith.addf %47, %59 : vector<8x128xf32>
    %cst_20 = arith.constant 5.000000e-01 : f32
    %61 = vector.broadcast %cst_20 : f32 to vector<8x128xf32>
    %62 = arith.mulf %61, %60 : vector<8x128xf32>
    %63 = math.tanh %62 : vector<8x128xf32>
    %cst_21 = arith.constant 5.000000e-01 : f32
    %64 = vector.broadcast %cst_21 : f32 to vector<8x128xf32>
    %65 = arith.mulf %64, %63 : vector<8x128xf32>
    %cst_22 = arith.constant 5.000000e-01 : f32
    %66 = vector.broadcast %cst_22 : f32 to vector<8x128xf32>
    %67 = arith.addf %65, %66 : vector<8x128xf32>
    %68 = arith.select %5, %67, %60 : vector<8x128xi1>, vector<8x128xf32>
    %c0_23 = arith.constant 0 : index
    %c0_24 = arith.constant 0 : index
    %69 = vector.load %arg4[%c0_23, %c0_24] : memref<8x128xf32, #tpu.memory_space<vmem>>, vector<8x128xf32>
    tpu.vector_store %arg4[%c0_23, %c0_24], %68 {strides = array<i32>} : memref<8x128xf32, #tpu.memory_space<vmem>>, vector<8x128xf32>,
    return
  }
  func.func @transform_0(%arg0: i32) -> (i32, i32) {
    %c0_i32 = arith.constant 0 : i32
    %c0_i32_0 = arith.constant 0 : i32
    return %arg0, %c0_i32 : i32, i32
  }
  func.func @transform_1(%arg0: i32) -> (i32, i32) {
    %c0_i32 = arith.constant 0 : i32
    %c0_i32_0 = arith.constant 0 : i32
    %c0_i32_1 = arith.constant 0 : i32
    return %c0_i32, %c0_i32_0 : i32, i32
  }
  func.func @transform_2(%arg0: i32) -> (i32, i32) {
    %c0_i32 = arith.constant 0 : i32
    %c0_i32_0 = arith.constant 0 : i32
    %c0_i32_1 = arith.constant 0 : i32
    return %c0_i32, %c0_i32_0 : i32, i32
  }
  func.func @transform_3(%arg0: i32) -> (i32, i32) {
    %c0_i32 = arith.constant 0 : i32
    %c0_i32_0 = arith.constant 0 : i32
    return %arg0, %c0_i32 : i32, i32
  }
}

</mosaic_0001>

<bundles_post_ra>
// kernel: tpu_custom_call.1
= control target key start
LH: loop header
LB: loop body
LE: loop exit
PB: predicated region body
PF: predicated region fallthrough
CT: control target
= control target key end

     0   :  { %8 = vsyncpa [#allocation3], 0  ;;  %s1720_s0 = inlined_call_operand.hbm [shape: f32[8,128], index: 0, kind: input, shape index: {}]   ;;  %s1721_s1 = inlined_call_operand.hbm [shape: f32[128,128], index: 1, kind: input, shape index: {}]   ;;  %s1722_s2 = inlined_call_operand.hbm [shape: f32[8,128], index: 2, kind: input, shape index: {}]   ;;  %s1723_s3 = inlined_call_operand.hbm [shape: f32[8,128], index: 3, kind: output, shape index: {}]  }
   0x1   :  { %9 = vsyncpa [#allocation6], 0 }
   0x2   :  { %10 = vsyncpa [#allocation4], 0  ;;  %s1392_s12 = smov [#allocation5]   ;;  %s1298_s16 = scalar_lea.hbm %s1721_s1, 2048 }
   0x3   :  { %s26_s13 = sshll.u32 %s1392_s12, 4  ;;  %p1299_p0 = scmp.ne.s32.totalorder %s1721_s1, %s1298_s16  ;;  %s27_s13 = int_to_ptr.vmem [resolvable:$true] %s26_s13 }
   0x4   :  { %p1302_p1 = scmp.lt.u32.totalorder %s1298_s16, %s1721_s1 }
   0x6   :  { %p1304_p2 = pnand %p1302_p1, %p1299_p0 }
   0x8   :  { %1307 = shalt.err (!%p1304_p2)
}
   0x9   :  { %s1308_s21 = scalar_lea.vmem %s27_s13, 2048  ;;  %p1313_p4 = scmp.lt.s32.totalorder %s27_s13, %s27_s13 }
   0xa   :  { %p1309_p3 = scmp.ne.s32.totalorder %s27_s13, %s1308_s21  ;;  %p1314_p5 = scmp.lt.s32.totalorder %s1308_s21, %s1308_s21 }
   0xc   :  { %p1315_p6 = por %p1314_p5, %p1313_p4 }
   0xe   :  { %p1316_p7 = pnand %p1315_p6, %p1309_p3 }
  0x10   :  { %1319 = shalt.err (!%p1316_p7)
}
  0x11   :  { %s1393_s22 = smov 128   ;;  %s1394_s23 = smov 8  }
  0x12   :  { %32 = dma.hbm_to_vmem [thread:$0]  %s1721_s1, 2048, %s27_s13, [#allocation6], %s1393_s22, %s1393_s22, %s1394_s23  }
  0x13   :  { %s1395_s26 = smov [#allocation2]   ;;  %s1396_s28 = smov [#allocation7]  }
  0x14   :  { %s17_s27 = sshll.u32 %s1395_s26, 4  ;;  %s39_s29 = sshll.u32 %s1396_s28, 4  ;;  %s18_s27 = int_to_ptr.vmem [resolvable:$true] %s17_s27  ;;  %s40_s29 = int_to_ptr.vmem [resolvable:$true] %s39_s29 }
  0x15   :  { %s1320_s5 = scalar_lea.hbm %s1720_s0, 128 }
  0x16   :  { %p1321_p8 = scmp.ne.s32.totalorder %s1720_s0, %s1320_s5  ;;  %p1324_p9 = scmp.lt.u32.totalorder %s1320_s5, %s1720_s0 }
  0x18   :  { %p1326_p10 = pnand %p1324_p9, %p1321_p8 }
  0x1a   :  { %1329 = shalt.err (!%p1326_p10)
}
  0x1b   :  { %s1330_s1 = scalar_lea.vmem %s18_s27, 128  ;;  %p1335_p12 = scmp.lt.s32.totalorder %s18_s27, %s18_s27 }
  0x1c   :  { %p1331_p11 = scmp.ne.s32.totalorder %s18_s27, %s1330_s1  ;;  %p1336_p13 = scmp.lt.s32.totalorder %s1330_s1, %s1330_s1 }
  0x1e   :  { %p1337_p0 = por %p1336_p13, %p1335_p12 }
  0x20   :  { %p1338_p1 = pnand %p1337_p0, %p1331_p11 }
  0x22   :  { %1341 = shalt.err (!%p1338_p1)
}
  0x23   :  { %20 = dma.hbm_to_vmem [thread:$0]  %s1720_s0, 128, %s18_s27, [#allocation3]  }
  0x24   :  { %s1342_s14 = scalar_lea.hbm %s1722_s2, 128 }
  0x25   :  { %p1343_p2 = scmp.ne.s32.totalorder %s1722_s2, %s1342_s14  ;;  %p1346_p3 = scmp.lt.u32.totalorder %s1342_s14, %s1722_s2 }
  0x27   :  { %p1348_p4 = pnand %p1346_p3, %p1343_p2 }
  0x29   :  { %1351 = shalt.err (!%p1348_p4)
}
  0x2a   :  { %s1352_s19 = scalar_lea.vmem %s40_s29, 128  ;;  %p1357_p6 = scmp.lt.s32.totalorder %s40_s29, %s40_s29 }
  0x2b   :  { %p1353_p5 = scmp.ne.s32.totalorder %s40_s29, %s1352_s19  ;;  %p1358_p7 = scmp.lt.s32.totalorder %s1352_s19, %s1352_s19 }
  0x2d   :  { %p1359_p8 = por %p1358_p7, %p1357_p6 }
  0x2f   :  { %p1360_p9 = pnand %p1359_p8, %p1353_p5 }
  0x31   :  { %1363 = shalt.err (!%p1360_p9)
}
  0x32   :  { %42 = dma.hbm_to_vmem [thread:$0]  %s1722_s2, 128, %s40_s29, [#allocation6]  }
  0x33   :  { %1386 = dma.done.wait [#allocation3], 128  }
  0x34   :  { %1387 = vsyncadd [#allocation3], 4294967168 }
  0x35   :  { %1388 = dma.done.wait [#allocation6], 2176  }
  0x36   :  { %1389 = vsyncadd [#allocation6], 4294965120  ;;  %v1397_v0 = vmov 0.0|0.0   ;;  %vm1398_vm0 = vmmov 0   ;;  %v1399_v1 = vmov 0.0   ;;  %v58_v2 = vld [vmem:[#allocation5] sm:$0xff] }
  0x37   :  { %1117 = vmatprep.subr.bf16.mxu1 %v1397_v0  ;;  %1189 = vmatprep.subr.bf16.mxu0 %v1397_v0  ;;  %v59_v3 = vld [vmem:[#allocation5 + $0x8] sm:$0xff]  ;;  %v60_v4 = vld [vmem:[#allocation5 + $0x10] sm:$0xff]  ;;  %v75_v5 = vand.u32 4294901760, %v58_v2  ;;  %v61_v7 = vld [vmem:[#allocation5 + $0x18] sm:$0xff]  ;;  %s1404_s2 = smov [#allocation8]  }
  0x38   :  { %939 = vmatprep.mubr.msk.f32.mxu1 %vm1398_vm0, %v1399_v1  ;;  %1044 = vmatprep.mubr.msk.f32.mxu0 %vm1398_vm0, %v1399_v1  ;;  %v78_v6 = vand.u32 4294901760, %v59_v3  ;;  %v81_v8 = vand.u32 4294901760, %v60_v4  ;;  %v84_v9 = vand.u32 4294901760, %v61_v7  ;;  %v62_v10 = vld [vmem:[#allocation5 + $0x20] sm:$0xff]  ;;  %v63_v11 = vld [vmem:[#allocation5 + $0x28] sm:$0xff]  ;;  %v64_v16 = vld [vmem:[#allocation5 + $0x30] sm:$0xff] }
  0x39   :  { %v87_v14 = vand.u32 4294901760, %v62_v10  ;;  %v90_v15 = vand.u32 4294901760, %v63_v11  ;;  %v65_v17 = vld [vmem:[#allocation5 + $0x38] sm:$0xff]  ;;  %v93_v19 = vand.u32 4294901760, %v64_v16  ;;  %v1481_v21 = vld [vmem:[#allocation5 + $0x40] sm:$0xff]  ;;  %v1483_v22 = vld [vmem:[#allocation5 + $0x48] sm:$0xff]  ;;  %v1497_v29 = vsub.f32 %v58_v2, %v75_v5 }
  0x3a   :  { %v1467_v12 = vpack.c.bf16 %v78_v6, %v75_v5  ;;  %v1471_v13 = vpack.c.bf16 %v84_v9, %v81_v8  ;;  %v96_v20 = vand.u32 4294901760, %v65_v17  ;;  %v99_v24 = vand.u32 4294901760, %v1481_v21  ;;  %v57_v26 = vld [vmem:[#allocation2] sm:$0xff]  ;;  %v1493_v27 = vld [vmem:[#allocation5 + $0x50] sm:$0xff]  ;;  %v1509_v35 = vld [vmem:[#allocation5 + $0x60] sm:$0xff]  ;;  %s791_s21 = sshll.u32 %s1404_s2, 4  ;;  %s792_s21 = int_to_ptr.vmem [resolvable:$true] %s791_s21 }
  0x3b   :  { %v1477_v18 = vpack.c.bf16 %v90_v15, %v87_v14  ;;  %v102_v25 = vand.u32 4294901760, %v1483_v22  ;;  %v1495_v28 = vld [vmem:[#allocation5 + $0x58] sm:$0xff]  ;;  %v1499_v30 = vand.u32 4294901760, %v57_v26  ;;  %v1501_v31 = vsub.f32 %v59_v3, %v78_v6  ;;  %v1513_v36 = vld [vmem:[#allocation5 + $0x68] sm:$0xff]  ;;  %v1532_v43 = vld [vmem:[#allocation5 + $0x70] sm:$0xff]  ;;  %s1364_s22 = scalar_lea.vmem %s792_s21, 128  ;;  %p1369_p11 = scmp.lt.s32.totalorder %s792_s21, %s792_s21 }
  0x3c   :  { %1119 = vmatpush3.bf16.msra.mxu1 %v1467_v12  ;;  %1191 = vmatpush3.bf16.msra.mxu0 %v1467_v12  ;;  %v1487_v23 = vpack.c.bf16 %v96_v20, %v93_v19  ;;  %v105_v33 = vand.u32 4294901760, %v1493_v27  ;;  %v108_v34 = vand.u32 4294901760, %v1495_v28  ;;  %v1515_v37 = vsub.f32 %v60_v4, %v81_v8  ;;  %v1534_v44 = vld [vmem:[#allocation5 + $0x78] sm:$0xff]  ;;  %p1365_p10 = scmp.ne.s32.totalorder %s792_s21, %s1364_s22  ;;  %p1370_p12 = scmp.lt.s32.totalorder %s1364_s22, %s1364_s22 }
  0x3d   :  { %1120 = vmatprep.subr.bf16.mxu1 %v1397_v0  ;;  %1192 = vmatprep.subr.bf16.mxu0 %v1397_v0  ;;  %v1505_v32 = vpack.c.bf16 %v102_v25, %v99_v24  ;;  %v1517_v38 = vsub.f32 %v61_v7, %v84_v9  ;;  %v111_v39 = vand.u32 4294901760, %v1509_v35  ;;  %v1521_v40 = vsub.f32 %v57_v26, %v1499_v30 }
  0x3e   :  { %v1529_v41 = vpack.c.bf16 %v108_v34, %v105_v33  ;;  %v114_v42 = vand.u32 4294901760, %v1513_v36  ;;  %v168_v45 = vand.u32 4294901760, %v1497_v29  ;;  %v175_v46 = vand.u32 4294901760, %v1501_v31  ;;  %p1371_p13 = por %p1370_p12, %p1369_p11 }
  0x3f   :  { %v1540_v47 = vsub.f32 %v62_v10, %v87_v14  ;;  %v1542_v48 = vsub.f32 %v63_v11, %v90_v15  ;;  %v117_v49 = vand.u32 4294901760, %v1532_v43  ;;  %v120_v50 = vand.u32 4294901760, %v1534_v44 }
  0x40   :  { %1122 = vmatpush3.bf16.msra.mxu1 %v1471_v13  ;;  %1194 = vmatpush3.bf16.msra.mxu0 %v1471_v13  ;;  %v157_v51 = vand.u32 4294901760, %v1521_v40  ;;  %v182_v52 = vand.u32 4294901760, %v1515_v37  ;;  %v1554_v53 = vpack.c.bf16 %v114_v42, %v111_v39  ;;  %v169_v54 = vsub.f32 %v1497_v29, %v168_v45  ;;  %p1372_p0 = pnand %p1371_p13, %p1365_p10 }
  0x41   :  { %1123 = vmatprep.subr.bf16.mxu1 %v1397_v0  ;;  %1195 = vmatprep.subr.bf16.mxu0 %v1397_v0  ;;  %v176_v55 = vsub.f32 %v1501_v31, %v175_v46  ;;  %v189_v56 = vand.u32 4294901760, %v1517_v38  ;;  %v1561_v57 = vsub.f32 %v64_v16, %v93_v19  ;;  %v1563_v58 = vsub.f32 %v65_v17, %v96_v20 }
  0x42   :  { %v158_v59 = vsub.f32 %v1521_v40, %v157_v51  ;;  %v183_v60 = vsub.f32 %v1515_v37, %v182_v52  ;;  %v196_v61 = vand.u32 4294901760, %v1540_v47  ;;  %v203_v62 = vand.u32 4294901760, %v1542_v48 }
  0x43   :  { %v1575_v63 = vpack.c.bf16 %v120_v50, %v117_v49  ;;  %v170_v2 = vand.u32 4294901760, %v169_v54  ;;  %v177_v3 = vand.u32 4294901760, %v176_v55  ;;  %v190_v4 = vsub.f32 %v1517_v38, %v189_v56 }
  0x44   :  { %1125 = vmatpush3.bf16.msra.mxu1 %v1477_v18  ;;  %1197 = vmatpush3.bf16.msra.mxu0 %v1477_v18  ;;  %v1581_v5 = vsub.f32 %v1481_v21, %v99_v24  ;;  %v1584_v6 = vsub.f32 %v1483_v22, %v102_v25  ;;  %v1214_v7 = vpack.c.bf16 %v175_v46, %v168_v45  ;;  %v159_v8 = vand.u32 4294901760, %v158_v59 }
  0x45   :  { %1126 = vmatprep.subr.bf16.mxu1 %v1397_v0  ;;  %1198 = vmatprep.subr.bf16.mxu0 %v1397_v0  ;;  %v184_v9 = vand.u32 4294901760, %v183_v60  ;;  %v197_v10 = vsub.f32 %v1540_v47, %v196_v61  ;;  %v204_v11 = vsub.f32 %v1542_v48, %v203_v62  ;;  %v1142_v14 = vpack.c.bf16 %v177_v3, %v170_v2 }
  0x46   :  { %v191_v15 = vand.u32 4294901760, %v190_v4  ;;  %v210_v16 = vand.u32 4294901760, %v1561_v57  ;;  %v217_v17 = vand.u32 4294901760, %v1563_v58  ;;  %v1597_v19 = vsub.f32 %v1493_v27, %v105_v33 }
  0x47   :  { %v1602_v20 = vsub.f32 %v1495_v28, %v108_v34  ;;  %v1217_v21 = vpack.c.bf16 %v189_v56, %v182_v52  ;;  %v198_v22 = vand.u32 4294901760, %v197_v10  ;;  %v205_v24 = vand.u32 4294901760, %v204_v11 }
  0x48   :  { %1128 = vmatpush3.bf16.msra.mxu1 %v1487_v23  ;;  %1200 = vmatpush3.bf16.msra.mxu0 %v1487_v23  ;;  %v224_v25 = vand.u32 4294901760, %v1581_v5  ;;  %v1145_v26 = vpack.c.bf16 %v191_v15, %v184_v9  ;;  %v211_v45 = vsub.f32 %v1561_v57, %v210_v16  ;;  %v218_v27 = vsub.f32 %v1563_v58, %v217_v17 }
  0x49   :  { %1129 = vmatprep.subr.bf16.mxu1 %v1397_v0  ;;  %1201 = vmatprep.subr.bf16.mxu0 %v1397_v0  ;;  %v231_v33 = vand.u32 4294901760, %v1584_v6  ;;  %v1613_v28 = vsub.f32 %v1509_v35, %v111_v39  ;;  %v1618_v34 = vsub.f32 %v1513_v36, %v114_v42  ;;  %v1148_v46 = vpack.c.bf16 %v205_v24, %v198_v22 }
  0x4a   :  { %v225_v52 = vsub.f32 %v1581_v5, %v224_v25  ;;  %v238_v54 = vand.u32 4294901760, %v1597_v19  ;;  %v212_v35 = vand.u32 4294901760, %v211_v45  ;;  %v219_v39 = vand.u32 4294901760, %v218_v27 }
  0x4b   :  { %v232_v55 = vsub.f32 %v1584_v6, %v231_v33  ;;  %v245_v36 = vand.u32 4294901760, %v1602_v20  ;;  %v1633_v42 = vsub.f32 %v1532_v43, %v117_v49  ;;  %v1638_v56 = vsub.f32 %v1534_v44, %v120_v50 }
  0x4c   :  { %1131 = vmatpush3.bf16.msra.mxu1 %v1505_v32  ;;  %1203 = vmatpush3.bf16.msra.mxu0 %v1505_v32  ;;  %v1223_v59 = vpack.c.bf16 %v217_v17, %v210_v16  ;;  %v226_v60 = vand.u32 4294901760, %v225_v52  ;;  %v1151_v2 = vpack.c.bf16 %v219_v39, %v212_v35  ;;  %v259_v43 = vand.u32 4294901760, %v1618_v34  ;;  %v802_v52 = vld [vmem:[#allocation7 + $0x1] ss:$0 sm:$0xff] }
  0x4d   :  { %1132 = vmatprep.subr.bf16.mxu1 %v1397_v0  ;;  %1204 = vmatprep.subr.bf16.mxu0 %v1397_v0  ;;  %v233_v3 = vand.u32 4294901760, %v232_v55  ;;  %v246_v4 = vsub.f32 %v1602_v20, %v245_v36  ;;  %v1226_v44 = vpack.c.bf16 %v231_v33, %v224_v25  ;;  %v273_v11 = vand.u32 4294901760, %v1638_v56 }
  0x4e   :  { %v260_v10 = vsub.f32 %v1618_v34, %v259_v43 }
  0x4f   :  { %v247_v9 = vand.u32 4294901760, %v246_v4  ;;  %v274_v22 = vsub.f32 %v1638_v56, %v273_v11 }
  0x50   :  { %1134 = vmatpush3.bf16.msra.mxu1 %v1529_v41  ;;  %1206 = vmatpush3.bf16.msra.mxu0 %v1529_v41  ;;  %v261_v17 = vand.u32 4294901760, %v260_v10  ;;  %v52_v10 = vlaneseq }
  0x51   :  { %1135 = vmatprep.subr.bf16.mxu1 %v1397_v0  ;;  %1207 = vmatprep.subr.bf16.mxu0 %v1397_v0  ;;  %v275_v45 = vand.u32 4294901760, %v274_v22 }
  0x54   :  { %1137 = vmatpush3.bf16.msra.mxu1 %v1554_v53  ;;  %1209 = vmatpush3.bf16.msra.mxu0 %v1554_v53 }
  0x55   :  { %1138 = vmatprep.subr.bf16.mxu1 %v1397_v0  ;;  %1210 = vmatprep.subr.bf16.mxu0 %v1397_v0 }
  0x58   :  { %1140 = vmatpush3.bf16.msra.mxu1 %v1575_v63  ;;  %1212 = vmatpush3.bf16.msra.mxu0 %v1575_v63 }
  0x59   :  { %1141 = vmatprep.subr.bf16.mxu1 %v1397_v0  ;;  %1213 = vmatprep.subr.bf16.mxu0 %v1397_v0 }
  0x5b   :  { %940 = vmatmul.mubr.f32.vlgmr.msra.gmra.mrb[0].mxu1 %v159_v8  ;;  %1045 = vmatmul.mubr.f32.vlgmr.msra.gmra.mrb[0].mxu0 %v157_v51  ;;  %v1220_v51 = vpack.c.bf16 %v203_v62, %v196_v61  ;;  %v239_v61 = vsub.f32 %v1597_v19, %v238_v54  ;;  %v252_v62 = vand.u32 4294901760, %v1613_v28  ;;  %v1154_v8 = vpack.c.bf16 %v233_v3, %v226_v60  ;;  %v803_v60 = vld [vmem:[#allocation7 + $0x2] ss:$0 sm:$0xff] }
  0x5c   :  { %1143 = vmatpush3.bf16.msra.mxu1 %v1142_v14  ;;  %1215 = vmatpush3.bf16.msra.mxu0 %v1214_v7  ;;  %v266_v7 = vand.u32 4294901760, %v1633_v42  ;;  %v1229_v14 = vpack.c.bf16 %v245_v36, %v238_v54 }
  0x5d   :  { %1144 = vmatprep.subr.bf16.mxu1 %v1397_v0  ;;  %1216 = vmatprep.subr.bf16.mxu0 %v1397_v0  ;;  %v240_v49 = vand.u32 4294901760, %v239_v61  ;;  %v253_v50 = vsub.f32 %v1613_v28, %v252_v62  ;;  %v1232_v25 = vpack.c.bf16 %v259_v43, %v252_v62 }
  0x5e   :  { %974 = vmatprep.mubr.msk.f32.mxu1 %vm1398_vm0, %v1399_v1  ;;  %1079 = vmatprep.mubr.msk.f32.mxu0 %vm1398_vm0, %v1399_v1  ;;  %v1235_v33 = vpack.c.bf16 %v273_v11, %v266_v7  ;;  %v53_v11 = vand.u32 127, %v52_v10 }
  0x5f   :  { %v254_v15 = vand.u32 4294901760, %v253_v50  ;;  %v1157_v16 = vpack.c.bf16 %v247_v9, %v240_v49  ;;  %v804_v49 = vld [vmem:[#allocation7 + $0x3] ss:$0 sm:$0xff] }
  0x60   :  { %1146 = vmatpush3.bf16.msra.mxu1 %v1145_v26  ;;  %1218 = vmatpush3.bf16.msra.mxu0 %v1217_v21  ;;  %v267_v21 = vsub.f32 %v1633_v42, %v266_v7  ;;  %vm54_vm1 = vcmp.ge.s32.totalorder %v53_v11, 9  ;;  %vm55_vm2 = vcmp.lt.s32.totalorder %v53_v11, 13 }
  0x61   :  { %1147 = vmatprep.subr.bf16.mxu1 %v1397_v0  ;;  %1219 = vmatprep.subr.bf16.mxu0 %v1397_v0  ;;  %v1160_v24 = vpack.c.bf16 %v261_v17, %v254_v15  ;;  %vm56_vm3 = vmand %vm54_vm1, %vm55_vm2 }
  0x62   :  { %v268_v26 = vand.u32 4294901760, %v267_v21 }
  0x64   :  { %1149 = vmatpush3.bf16.msra.mxu1 %v1148_v46  ;;  %1221 = vmatpush3.bf16.msra.mxu0 %v1220_v51  ;;  %v1163_v27 = vpack.c.bf16 %v275_v45, %v268_v26  ;;  %v1166_v46 = vpack.c.bf16 %v1501_v31, %v1497_v29  ;;  %v1169_v51 = vpack.c.bf16 %v1517_v38, %v1515_v37  ;;  %v1400_v31 = vmov 9  }
  0x65   :  { %1150 = vmatprep.subr.bf16.mxu1 %v1397_v0  ;;  %1222 = vmatprep.subr.bf16.mxu0 %v1397_v0  ;;  %v1172_v29 = vpack.c.bf16 %v1542_v48, %v1540_v47 }
  0x66   :  { %1283 = vset.pattern.permute.xlu0 %v1400_v31 }
  0x68   :  { %1152 = vmatpush3.bf16.msra.mxu1 %v1151_v2  ;;  %1224 = vmatpush3.bf16.msra.mxu0 %v1223_v59  ;;  %v1403_v59 = vmov 12  }
  0x69   :  { %1153 = vmatprep.subr.bf16.mxu1 %v1397_v0  ;;  %1225 = vmatprep.subr.bf16.mxu0 %v1397_v0 }
  0x6c   :  { %1155 = vmatpush3.bf16.msra.mxu1 %v1154_v8  ;;  %1227 = vmatpush3.bf16.msra.mxu0 %v1226_v44 }
  0x6d   :  { %1156 = vmatprep.subr.bf16.mxu1 %v1397_v0  ;;  %1228 = vmatprep.subr.bf16.mxu0 %v1397_v0 }
  0x70   :  { %1158 = vmatpush3.bf16.msra.mxu1 %v1157_v16  ;;  %1230 = vmatpush3.bf16.msra.mxu0 %v1229_v14 }
  0x71   :  { %1159 = vmatprep.subr.bf16.mxu1 %v1397_v0  ;;  %1231 = vmatprep.subr.bf16.mxu0 %v1397_v0 }
  0x74   :  { %1161 = vmatpush3.bf16.msra.mxu1 %v1160_v24  ;;  %1233 = vmatpush3.bf16.msra.mxu0 %v1232_v25 }
  0x75   :  { %1162 = vmatprep.subr.bf16.mxu1 %v1397_v0  ;;  %1234 = vmatprep.subr.bf16.mxu0 %v1397_v0 }
  0x78   :  { %1164 = vmatpush3.bf16.msra.mxu1 %v1163_v27  ;;  %1236 = vmatpush3.bf16.msra.mxu0 %v1235_v33 }
  0x79   :  { %1165 = vmatprep.subr.bf16.mxu1 %v1397_v0  ;;  %1237 = vmatprep.subr.bf16.mxu0 %v1397_v0 }
  0x7b   :  { %975 = vmatmul.mubr.f32.vlgmr.msra.gmra.mrb[0].mxu1 %v1499_v30  ;;  %1080 = vmatmul.mubr.f32.vlgmr.msra.gmra.mrb[0].mxu0 %v1499_v30 }
  0x7c   :  { %1167 = vmatpush3.bf16.msra.mxu1 %v1166_v46  ;;  %1239 = vmatpush3.bf16.msra.mxu0 %v1467_v12  ;;  %v1175_v12 = vpack.c.bf16 %v1563_v58, %v1561_v57 }
  0x7d   :  { %1168 = vmatprep.subr.bf16.mxu1 %v1397_v0  ;;  %1240 = vmatprep.subr.bf16.mxu0 %v1397_v0 }
  0x7e   :  { %1009 = vmatprep.mubr.msk.f32.mxu1 %vm1398_vm0, %v1399_v1  ;;  %1114 = vmatprep.mubr.msk.f32.mxu0 %vm1398_vm0, %v1399_v1  ;;  %v1178_v1 = vpack.c.bf16 %v1584_v6, %v1581_v5 }
  0x80   :  { %1170 = vmatpush3.bf16.msra.mxu1 %v1169_v51  ;;  %1242 = vmatpush3.bf16.msra.mxu0 %v1471_v13  ;;  %v1181_v13 = vpack.c.bf16 %v1602_v20, %v1597_v19 }
  0x81   :  { %1171 = vmatprep.subr.bf16.mxu1 %v1397_v0  ;;  %1243 = vmatprep.subr.bf16.mxu0 %v1397_v0 }
  0x84   :  { %1173 = vmatpush3.bf16.msra.mxu1 %v1172_v29  ;;  %1245 = vmatpush3.bf16.msra.mxu0 %v1477_v18  ;;  %v1184_v18 = vpack.c.bf16 %v1618_v34, %v1613_v28  ;;  %v1402_v34 = vmov 11  }
  0x85   :  { %1174 = vmatprep.subr.bf16.mxu1 %v1397_v0  ;;  %1246 = vmatprep.subr.bf16.mxu0 %v1397_v0 }
  0x86   :  { %1285 = vset.pattern.permute.xlu1 %v1402_v34 }
  0x88   :  { %1176 = vmatpush3.bf16.msra.mxu1 %v1175_v12  ;;  %1248 = vmatpush3.bf16.msra.mxu0 %v1487_v23  ;;  %v1187_v23 = vpack.c.bf16 %v1638_v56, %v1633_v42 }
  0x89   :  { %1177 = vmatprep.subr.bf16.mxu1 %v1397_v0  ;;  %1249 = vmatprep.subr.bf16.mxu0 %v1397_v0 }
  0x8c   :  { %1179 = vmatpush3.bf16.msra.mxu1 %v1178_v1  ;;  %1251 = vmatpush3.bf16.msra.mxu0 %v1505_v32 }
  0x8d   :  { %1180 = vmatprep.subr.bf16.mxu1 %v1397_v0  ;;  %1252 = vmatprep.subr.bf16.mxu0 %v1397_v0 }
  0x90   :  { %1182 = vmatpush3.bf16.msra.mxu1 %v1181_v13  ;;  %1254 = vmatpush3.bf16.msra.mxu0 %v1529_v41 }
  0x91   :  { %1183 = vmatprep.subr.bf16.mxu1 %v1397_v0  ;;  %1255 = vmatprep.subr.bf16.mxu0 %v1397_v0 }
  0x94   :  { %1185 = vmatpush3.bf16.msra.mxu1 %v1184_v18  ;;  %1257 = vmatpush3.bf16.msra.mxu0 %v1554_v53 }
  0x95   :  { %1186 = vmatprep.subr.bf16.mxu1 %v1397_v0  ;;  %1258 = vmatprep.subr.bf16.mxu0 %v1397_v0  ;;  %v1401_v0 = vmov 10  }
  0x98   :  { %1188 = vmatpush3.bf16.msra.mxu1 %v1187_v23  ;;  %1260 = vmatpush3.bf16.msra.mxu0 %v1575_v63  ;;  %v801_v63 = vld [vmem:[#allocation7] ss:$0 sm:$0xff] }
  0x9b   :  { %1010 = vmatmul.mubr.f32.vlgmr.msra.gmra.mrb[0].mxu1 %v1521_v40  ;;  %1115 = vmatmul.mubr.f32.vlgmr.msra.gmra.mrb[0].mxu0 %v1499_v30 }
 0x16e   :  { %v416_v32 = vpop.f32.mrb[0].mxu1  ;;  %v711_v37 = vpop.f32.mrb[0].mxu0 }
 0x16f   :  { %v1261_v38 = vadd.f32 %v711_v37, %v416_v32  ;;  %v1011_v41 = vpop.f32.mrb[1].mxu1  ;;  %v1116_v47 = vpop.f32.mrb[1].mxu0 }
 0x171   :  { %v715_v48 = vmul.f32 0.5, %v1261_v38 }
 0x173   :  { %1288 = vtanh.f32 %v715_v48 }
 0x17d   :  { %v1289_v53 = vpop.eup %1288 }
 0x17e   :  { %v717_v57 = vmul.f32 0.5, %v1289_v53 }
 0x180   :  { %v718_v58 = vadd.f32 0.5, %v717_v57 }
 0x182   :  { %722 = vperm.xlu0 %1283, %v718_v58  }
 0x186   :  { %1284 = vset.pattern.permute.xlu0 %v1401_v0 }
 0x201   :  { %v723_v5 = vpop.permute.xlu0 %722 }
 0x202   :  { %v729_v40 = vmul.f32 %v801_v63, %v723_v5 }
 0x204   :  { %v730_v6 = vadd.f32 %v1261_v38, %v729_v40 }
 0x206   :  { %v731_v30 = vmul.f32 0.5, %v730_v6 }
 0x208   :  { %1290 = vtanh.f32 %v731_v30 }
 0x212   :  { %v1291_v19 = vpop.eup %1290 }
 0x213   :  { %v733_v20 = vmul.f32 0.5, %v1291_v19 }
 0x215   :  { %v734_v28 = vadd.f32 0.5, %v733_v20 }
 0x217   :  { %738 = vperm.xlu0 %1284, %v734_v28  }
 0x21b   :  { %1287 = vset.pattern.permute.xlu0 %v1403_v59 }
 0x296   :  { %v739_v54 = vpop.permute.xlu0 %738 }
 0x297   :  { %v745_v35 = vmul.f32 %v802_v52, %v739_v54 }
 0x299   :  { %v746_v39 = vadd.f32 %v745_v35, %v730_v6 }
 0x29b   :  { %v747_v55 = vmul.f32 0.5, %v746_v39 }
 0x29d   :  { %1292 = vtanh.f32 %v747_v55 }
 0x2a7   :  { %v1293_v36 = vpop.eup %1292 }
 0x2a8   :  { %v749_v42 = vmul.f32 0.5, %v1293_v36 }
 0x2aa   :  { %v750_v56 = vadd.f32 0.5, %v749_v42 }
 0x2ac   :  { %754 = vperm.xlu1 %1285, %v750_v56  }
 0x2b0   :  { %1286 = vset.pattern.permute.xlu1 %v1403_v59 }
 0x32b   :  { %v755_v61 = vpop.permute.xlu1 %754 }
 0x32c   :  { %v761_v62 = vmul.f32 %v803_v60, %v755_v61 }
 0x32e   :  { %v762_v2 = vadd.f32 %v761_v62, %v746_v39 }
 0x330   :  { %v763_v3 = vmul.f32 0.5, %v762_v2 }
 0x332   :  { %1294 = vtanh.f32 %v763_v3 }
 0x33c   :  { %v1295_v4 = vpop.eup %1294 }
 0x33d   :  { %v765_v43 = vmul.f32 0.5, %v1295_v4 }
 0x33f   :  { %v766_v44 = vadd.f32 0.5, %v765_v43 }
 0x341   :  { %770 = vperm.xlu1 %1286, %v766_v44  }
 0x3c0   :  { %v771_v50 = vpop.permute.xlu1 %770 }
 0x3c1   :  { %v777_v7 = vmul.f32 %v804_v49, %v771_v50 }
 0x3c3   :  { %v778_v8 = vadd.f32 %v777_v7, %v762_v2 }
 0x3c5   :  { %v779_v9 = vmul.f32 0.5, %v778_v8 }
 0x3c7   :  { %1296 = vtanh.f32 %v779_v9 }
 0x3d1   :  { %v1297_v14 = vpop.eup %1296 }
 0x3d2   :  { %v781_v15 = vmul.f32 0.5, %v1297_v14 }
 0x3d4   :  { %v782_v16 = vadd.f32 0.5, %v781_v15 }
 0x3d6   :  { %v783_v17 = vsel %vm56_vm3, %v782_v16, %v778_v8 }
 0x3d7   :  { %784 = vst [vmem:[#allocation8] sm:$0xff] %v783_v17 }
 0x3d8   :  { %1375 = shalt.err (!%p1372_p0)
}
 0x3d9   :  { %s1376_s25 = scalar_lea.hbm %s1723_s3, 128 }
 0x3da   :  { %p1377_p1 = scmp.ne.s32.totalorder %s1723_s3, %s1376_s25  ;;  %p1380_p2 = scmp.lt.u32.totalorder %s1376_s25, %s1723_s3 }
 0x3dc   :  { %p1382_p3 = pnand %p1380_p2, %p1377_p1 }
 0x3de   :  { %1385 = shalt.err (!%p1382_p3)
}
 0x3df   :  { %794 = dma.vmem_to_hbm [thread:$0]  %s792_s21, 128, %s1723_s3, [#allocation4]  }
 0x3e0   :  { %1390 = dma.done.wait [#allocation4], 128  }
 0x3e1   :  { %1391 = vsyncadd [#allocation4], 4294967168 }
 0x3e2   :  { %798 = vsyncpa [#allocation3], 1 }
 0x3e3   :  { %799 = vsyncpa [#allocation6], 1 }
 0x3e4   :  { %800 = vsyncpa [#allocation4], 1 }

</bundles_post_ra>
